<compile_context>
chip_gen: v7x
topology: tpu7x:2x2x1
jax: 0.10.0
libtpu: 0.0.40
codegen_flags: <defaults>
</compile_context>

<pallas_src>
import jax
import jax.numpy as jnp
from jax.experimental import pallas as pl
from jax.experimental.pallas import tpu as pltpu


HIDDEN = 256  # hidden_size = (256, 256, 256)


# --------------------------------------------------------------------------
# Kernel
# --------------------------------------------------------------------------
def _critic_kernel(x_ref,                       # [TB, S+A] bf16 (state||action)
                   w1_ref, b1_ref,              # fused l1||l5: [in,512] / [1,512]
                   w26_ref, b26_ref,            # l2||l6: [256,512] / [1,512]
                   w37_ref, b37_ref,            # l3||l7: [256,512] / [1,512]
                   w48_ref, b48_ref,            # l4^T||l8^T: [1,512] / [1,2]
                   q_ref):                      # [TB, 2]  (q1, q2)
    # Fused first layer of BOTH heads: one K=(S+A) matmul -> [TB, 512] f32.
    h0 = jnp.dot(x_ref[...], w1_ref[...],
                 preferred_element_type=jnp.float32) + b1_ref[...]
    h0 = jnp.maximum(h0, 0.0)

    def tail(h, lo, hi):
        # Two 256x256 layers on the MXU (bf16 in, f32 accumulate).  The lane
        # slices [lo:hi] are 256-aligned -> views, no copies.
        h = jnp.dot(h.astype(jnp.bfloat16), w26_ref[:, lo:hi],
                    preferred_element_type=jnp.float32) + b26_ref[:, lo:hi]
        h = jnp.maximum(h, 0.0)
        h = jnp.dot(h.astype(jnp.bfloat16), w37_ref[:, lo:hi],
                    preferred_element_type=jnp.float32) + b37_ref[:, lo:hi]
        h = jnp.maximum(h, 0.0)
        # N=1 output layer as VPU multiply + lane reduction (skip the MXU).
        return jnp.sum(h * w48_ref[:, lo:hi], axis=-1, keepdims=True)

    q1 = tail(h0[:, :HIDDEN], 0, HIDDEN) + b48_ref[:, 0:1]
    q2 = tail(h0[:, HIDDEN:], HIDDEN, 2 * HIDDEN) + b48_ref[:, 1:2]

    # Single merged store of both heads ([TB, 2]) instead of two width-1 stores.
    lane = jax.lax.broadcasted_iota(jnp.int32, q_ref.shape, 1)
    q_ref[...] = jnp.where(lane == 0, q1, q2).astype(q_ref.dtype)


# --------------------------------------------------------------------------
# Parameter construction / packing
# --------------------------------------------------------------------------
def init_critic_params(key, state_dim, action_dim, dtype=jnp.float32):
    """Per-layer params matching nn.Linear shapes: W stored as [in, out], b as [out].

    Returns [(W, b)] for l1..l4, l5..l8 (the two Q heads used by forward()).
    """
    in_dim = state_dim + action_dim
    dims = [(in_dim, HIDDEN), (HIDDEN, HIDDEN), (HIDDEN, HIDDEN), (HIDDEN, 1)]
    raw = []
    for _head in range(2):
        for din, dout in dims:
            key, kw, kb = jax.random.split(key, 3)
            bound = 1.0 / (float(din) ** 0.5)
            w = jax.random.uniform(kw, (din, dout), dtype, -bound, bound)
            b = jax.random.uniform(kb, (dout,), dtype, -bound, bound)
            raw.append((w, b))
    return raw
    # TODO(synk): the module's unused-in-forward value head (v1..v4) and the
    # q1()/v() methods are not implemented here; forward() only needs l1..l8.


def pack_critic_params(raw, w_dtype=jnp.bfloat16):
    """Pack per-layer params into the fused kernel layout (once, off hot path)."""
    (W1, B1), (W2, B2), (W3, B3), (W4, B4), \
        (W5, B5), (W6, B6), (W7, B7), (W8, B8) = raw

    w1 = jnp.concatenate([W1, W5], axis=1).astype(w_dtype)            # [in, 512]
    b1 = jnp.concatenate([B1, B5])[None, :].astype(jnp.float32)       # [1, 512]
    w26 = jnp.concatenate([W2, W6], axis=1).astype(w_dtype)           # [256, 512]
    b26 = jnp.concatenate([B2, B6])[None, :].astype(jnp.float32)      # [1, 512]
    w37 = jnp.concatenate([W3, W7], axis=1).astype(w_dtype)           # [256, 512]
    b37 = jnp.concatenate([B3, B7])[None, :].astype(jnp.float32)      # [1, 512]
    # Final N=1 layers kept as f32 row vectors (used on the VPU, not the MXU).
    w48 = jnp.concatenate([W4.T, W8.T], axis=1).astype(jnp.float32)   # [1, 512]
    b48 = jnp.concatenate([B4, B8])[None, :].astype(jnp.float32)      # [1, 2]

    return (w1, b1, w26, b26, w37, b37, w48, b48)


# --------------------------------------------------------------------------
# Wrapper
# --------------------------------------------------------------------------
def _round_up(x, m):
    return ((x + m - 1) // m) * m


def _num_tensorcores():
    """2 on v7x (megacore sharding target), 1 on v5e/v6e. Never raises."""
    try:
        kind = jax.devices()[0].device_kind.lower()
        if "v7" in kind or "7x" in kind:
            return 2
    except Exception:
        pass
    return 1


def critic_forward(state, action, params, *, block_b=1024):
    """Critic.forward: returns (q1, q2), each [B, 1] float32."""
    B, S = state.shape
    A = action.shape[1]
    in_dim = S + A

    # Concatenate state||action once in the wrapper, already in bf16
    # (halves activation DMA and removes the in-kernel cast).
    x = jnp.concatenate([state.astype(jnp.bfloat16),
                         action.astype(jnp.bfloat16)], axis=1)

    # Batch tile: multiple of 16 (bf16 sublane packing).  At least `ncores`
    # grid steps so the parallel dim can shard across TensorCores (v7x),
    # otherwise as few steps as possible (v5e/v6e single TC: per-step
    # overhead ~0.35 us dominates for this tiny network).
    ALIGN = 16
    ncores = _num_tensorcores()
    B_al = _round_up(max(B, ALIGN), ALIGN)
    TB = int(min(block_b, _round_up(pl.cdiv(B_al, ncores), ALIGN)))
    B_pad = _round_up(B_al, TB)
    if B_pad != B:
        x = jnp.pad(x, ((0, B_pad - B), (0, 0)))
    grid = (B_pad // TB,)

    act_spec = pl.BlockSpec((TB, in_dim), lambda i: (i, 0))
    # Weights/biases: full-shape blocks, constant index map -> VMEM-resident.
    w_specs = [pl.BlockSpec(p.shape, lambda i: (0, 0)) for p in params]

    # Advisory cost estimate so XLA schedules surrounding ops sensibly.
    flops = (2 * B_pad * in_dim * 2 * HIDDEN            # fused first layer
             + 4 * 2 * B_pad * HIDDEN * HIDDEN          # l2,l3,l6,l7
             + 2 * 2 * B_pad * HIDDEN)                  # final mul+reduce
    weight_bytes = ((in_dim * 2 * HIDDEN + 4 * HIDDEN * HIDDEN) * 2   # bf16 weights
                    + (4 * HIDDEN + 2 * HIDDEN + 2) * 4)              # f32 biases/out rows
    bytes_accessed = weight_bytes + B_pad * in_dim * 2 + B_pad * 2 * 4
    cost = pl.CostEstimate(flops=int(flops), transcendentals=0,
                           bytes_accessed=int(bytes_accessed))

    q = pl.pallas_call(
        _critic_kernel,
        out_shape=jax.ShapeDtypeStruct((B_pad, 2), jnp.float32),
        grid=grid,
        in_specs=[act_spec] + w_specs,
        out_specs=pl.BlockSpec((TB, 2), lambda i: (i, 0)),
        compiler_params=pltpu.CompilerParams(
            dimension_semantics=("parallel",),
            vmem_limit_bytes=32 * 1024 * 1024),
        cost_estimate=cost,
    )(x, *params)

    return q[:B, 0:1], q[:B, 1:2]


# --------------------------------------------------------------------------
# References (for correctness checks)
# --------------------------------------------------------------------------
def _reference_packed(state, action, p):
    """Mirrors the kernel math (bf16 inputs/weights, f32 accumulation) in plain JAX."""
    (w1, b1, w26, b26, w37, b37, w48, b48) = p
    f32 = jnp.float32
    x = jnp.concatenate([state.astype(w1.dtype), action.astype(w1.dtype)], axis=1)
    h0 = jnp.maximum(jnp.dot(x, w1, preferred_element_type=f32) + b1, 0.0)

    def tail(h, lo, hi):
        h = jnp.maximum(jnp.dot(h.astype(w26.dtype), w26[:, lo:hi],
                                preferred_element_type=f32) + b26[:, lo:hi], 0.0)
        h = jnp.maximum(jnp.dot(h.astype(w37.dtype), w37[:, lo:hi],
                                preferred_element_type=f32) + b37[:, lo:hi], 0.0)
        return jnp.sum(h * w48[:, lo:hi], axis=-1, keepdims=True)

    q1 = tail(h0[:, :HIDDEN], 0, HIDDEN) + b48[:, 0:1]
    q2 = tail(h0[:, HIDDEN:], HIDDEN, 2 * HIDDEN) + b48[:, 1:2]
    return q1, q2


def _reference_f32(state, action, raw):
    """Original (unfused, f32) Critic.forward math — validates the packing."""
    x = jnp.concatenate([state, action], axis=1)

    def head(layers):
        h = x
        for W, B in layers[:3]:
            h = jnp.maximum(h @ W + B, 0.0)
        W, B = layers[3]
        return h @ W + B

    return head(raw[:4]), head(raw[4:])


# --------------------------------------------------------------------------
if __name__ == "__main__":
    state_dim, action_dim, batch = 16, 8, 2

    key = jax.random.PRNGKey(0)
    kp, ks, ka = jax.random.split(key, 3)

    raw = init_critic_params(kp, state_dim, action_dim)
    params = pack_critic_params(raw)

    state = jax.random.normal(ks, (batch, state_dim), jnp.float32)
    action = jax.random.normal(ka, (batch, action_dim), jnp.float32)

    q1, q2 = critic_forward(state, action, params)
    jax.block_until_ready((q1, q2))
    assert q1.shape == (batch, 1) and q2.shape == (batch, 1)

    # Exact-math check (same bf16 inputs/weights, f32 accumulation as the kernel).
    r1, r2 = _reference_packed(state, action, params)
    assert jnp.allclose(q1, r1, atol=5e-3), "q1 mismatch vs packed reference"
    assert jnp.allclose(q2, r2, atol=5e-3), "q2 mismatch vs packed reference"

    # Loose check against the original f32 module math (validates the packing;
    # slack covers intentional bf16 quantization of inputs + weights).
    f1, f2 = _reference_f32(state, action, raw)
    assert jnp.allclose(q1, f1, atol=1e-1, rtol=1e-2), "q1 mismatch vs f32 reference"
    assert jnp.allclose(q2, f2, atol=1e-1, rtol=1e-2), "q2 mismatch vs f32 reference"

    # Larger batch: exercises the batch grid (multiple tiles) and padding path.
    B2 = 1000
    ks2, ka2 = jax.random.split(jax.random.PRNGKey(1))
    s2 = jax.random.normal(ks2, (B2, state_dim), jnp.float32)
    a2 = jax.random.normal(ka2, (B2, action_dim), jnp.float32)
    g1, g2 = critic_forward(s2, a2, params)
    jax.block_until_ready((g1, g2))
    p1, p2 = _reference_packed(s2, a2, params)
    assert g1.shape == (B2, 1) and g2.shape == (B2, 1)
    assert jnp.allclose(g1, p1, atol=5e-3), "large-batch q1 mismatch"
    assert jnp.allclose(g2, p2, atol=5e-3), "large-batch q2 mismatch"

    print("KERNEL_OK")
</pallas_src>

<mosaic_0001>
module attributes {stable_mosaic.version = 11 : i64} {
  func.func @_critic_kernel(%arg0: i32, %arg1: memref<16x24xbf16, #tpu.memory_space<vmem>>, %arg2: memref<24x512xbf16, #tpu.memory_space<vmem>>, %arg3: memref<1x512xf32, #tpu.memory_space<vmem>>, %arg4: memref<256x512xbf16, #tpu.memory_space<vmem>>, %arg5: memref<1x512xf32, #tpu.memory_space<vmem>>, %arg6: memref<256x512xbf16, #tpu.memory_space<vmem>>, %arg7: memref<1x512xf32, #tpu.memory_space<vmem>>, %arg8: memref<1x512xf32, #tpu.memory_space<vmem>>, %arg9: memref<1x2xf32, #tpu.memory_space<vmem>>, %arg10: memref<16x2xf32, #tpu.memory_space<vmem>>) attributes {dimension_semantics = [#tpu.dimension_semantics<parallel>], iteration_bounds = array<i64: 1>, scalar_prefetch = 0 : i64, scratch_operands = 0 : i64, tpu.core_type = #tpu.core_type<tc>, window_params = [{transform_indices = @transform_0, window_bounds = array<i64: 16, 24>}, {pipeline_mode = #tpu.pipeline_mode<synchronous>, transform_indices = @transform_1, window_bounds = array<i64: 24, 512>}, {pipeline_mode = #tpu.pipeline_mode<synchronous>, transform_indices = @transform_2, window_bounds = array<i64: 1, 512>}, {pipeline_mode = #tpu.pipeline_mode<synchronous>, transform_indices = @transform_3, window_bounds = array<i64: 256, 512>}, {pipeline_mode = #tpu.pipeline_mode<synchronous>, transform_indices = @transform_4, window_bounds = array<i64: 1, 512>}, {pipeline_mode = #tpu.pipeline_mode<synchronous>, transform_indices = @transform_5, window_bounds = array<i64: 256, 512>}, {pipeline_mode = #tpu.pipeline_mode<synchronous>, transform_indices = @transform_6, window_bounds = array<i64: 1, 512>}, {pipeline_mode = #tpu.pipeline_mode<synchronous>, transform_indices = @transform_7, window_bounds = array<i64: 1, 512>}, {pipeline_mode = #tpu.pipeline_mode<synchronous>, transform_indices = @transform_8, window_bounds = array<i64: 1, 2>}, {transform_indices = @transform_9, window_bounds = array<i64: 16, 2>}]} {
    %c0 = arith.constant 0 : index
    %c0_0 = arith.constant 0 : index
    %0 = vector.load %arg1[%c0, %c0_0] : memref<16x24xbf16, #tpu.memory_space<vmem>>, vector<16x24xbf16>
    %c0_1 = arith.constant 0 : index
    %c0_2 = arith.constant 0 : index
    %1 = vector.load %arg2[%c0_1, %c0_2] : memref<24x512xbf16, #tpu.memory_space<vmem>>, vector<24x512xbf16>
    %cst = arith.constant dense<0.000000e+00> : vector<16x512xf32>
    %2 = tpu.matmul %0, %1, %cst {dimension_numbers = #tpu.dot_dimension_numbers<[1], [0], [0], [1], [0, 0, 1, 1], [], []>} : vector<16x24xbf16>, vector<24x512xbf16>, vector<16x512xf32> -> vector<16x512xf32>
    %c0_3 = arith.constant 0 : index
    %c0_4 = arith.constant 0 : index
    %3 = vector.load %arg3[%c0_3, %c0_4] : memref<1x512xf32, #tpu.memory_space<vmem>>, vector<1x512xf32>
    %4 = vector.broadcast %3 : vector<1x512xf32> to vector<16x512xf32>
    %5 = arith.addf %2, %4 : vector<16x512xf32>
    %cst_5 = arith.constant 0.000000e+00 : f32
    %6 = vector.broadcast %cst_5 : f32 to vector<16x512xf32>
    %7 = arith.maximumf %5, %6 : vector<16x512xf32>
    %8 = vector.extract_strided_slice %7 {offsets = [0, 0], sizes = [16, 256], strides = [1, 1]} : vector<16x512xf32> to vector<16x256xf32>
    %9 = arith.truncf %8 : vector<16x256xf32> to vector<16x256xbf16>
    %c0_6 = arith.constant 0 : index
    %c0_7 = arith.constant 0 : index
    %10 = vector.load %arg4[%c0_6, %c0_7] : memref<256x512xbf16, #tpu.memory_space<vmem>>, vector<256x256xbf16>
    %cst_8 = arith.constant dense<0.000000e+00> : vector<16x256xf32>
    %11 = tpu.matmul %9, %10, %cst_8 {dimension_numbers = #tpu.dot_dimension_numbers<[1], [0], [0], [1], [0, 0, 1, 1], [], []>} : vector<16x256xbf16>, vector<256x256xbf16>, vector<16x256xf32> -> vector<16x256xf32>
    %c0_9 = arith.constant 0 : index
    %c0_10 = arith.constant 0 : index
    %12 = vector.load %arg5[%c0_9, %c0_10] : memref<1x512xf32, #tpu.memory_space<vmem>>, vector<1x256xf32>
    %13 = vector.broadcast %12 : vector<1x256xf32> to vector<16x256xf32>
    %14 = arith.addf %11, %13 : vector<16x256xf32>
    %cst_11 = arith.constant 0.000000e+00 : f32
    %15 = vector.broadcast %cst_11 : f32 to vector<16x256xf32>
    %16 = arith.maximumf %14, %15 : vector<16x256xf32>
    %17 = arith.truncf %16 : vector<16x256xf32> to vector<16x256xbf16>
    %c0_12 = arith.constant 0 : index
    %c0_13 = arith.constant 0 : index
    %18 = vector.load %arg6[%c0_12, %c0_13] : memref<256x512xbf16, #tpu.memory_space<vmem>>, vector<256x256xbf16>
    %cst_14 = arith.constant dense<0.000000e+00> : vector<16x256xf32>
    %19 = tpu.matmul %17, %18, %cst_14 {dimension_numbers = #tpu.dot_dimension_numbers<[1], [0], [0], [1], [0, 0, 1, 1], [], []>} : vector<16x256xbf16>, vector<256x256xbf16>, vector<16x256xf32> -> vector<16x256xf32>
    %c0_15 = arith.constant 0 : index
    %c0_16 = arith.constant 0 : index
    %20 = vector.load %arg7[%c0_15, %c0_16] : memref<1x512xf32, #tpu.memory_space<vmem>>, vector<1x256xf32>
    %21 = vector.broadcast %20 : vector<1x256xf32> to vector<16x256xf32>
    %22 = arith.addf %19, %21 : vector<16x256xf32>
    %cst_17 = arith.constant 0.000000e+00 : f32
    %23 = vector.broadcast %cst_17 : f32 to vector<16x256xf32>
    %24 = arith.maximumf %22, %23 : vector<16x256xf32>
    %c0_18 = arith.constant 0 : index
    %c0_19 = arith.constant 0 : index
    %25 = vector.load %arg8[%c0_18, %c0_19] : memref<1x512xf32, #tpu.memory_space<vmem>>, vector<1x256xf32>
    %26 = vector.broadcast %25 : vector<1x256xf32> to vector<16x256xf32>
    %27 = arith.mulf %24, %26 : vector<16x256xf32>
    %cst_20 = arith.constant dense<0.000000e+00> : vector<16xf32>
    %28 = vector.multi_reduction <add>, %27, %cst_20 [1] : vector<16x256xf32> to vector<16xf32>
    %29 = vector.shape_cast %28 : vector<16xf32> to vector<16x1xf32>
    %c0_21 = arith.constant 0 : index
    %c0_22 = arith.constant 0 : index
    %30 = vector.load %arg9[%c0_21, %c0_22] : memref<1x2xf32, #tpu.memory_space<vmem>>, vector<1x1xf32>
    %31 = vector.broadcast %30 : vector<1x1xf32> to vector<16x1xf32>
    %32 = arith.addf %29, %31 : vector<16x1xf32>
    %33 = vector.extract_strided_slice %7 {offsets = [0, 256], sizes = [16, 256], strides = [1, 1]} : vector<16x512xf32> to vector<16x256xf32>
    %34 = arith.truncf %33 : vector<16x256xf32> to vector<16x256xbf16>
    %c0_23 = arith.constant 0 : index
    %c256 = arith.constant 256 : index
    %35 = vector.load %arg4[%c0_23, %c256] : memref<256x512xbf16, #tpu.memory_space<vmem>>, vector<256x256xbf16>
    %cst_24 = arith.constant dense<0.000000e+00> : vector<16x256xf32>
    %36 = tpu.matmul %34, %35, %cst_24 {dimension_numbers = #tpu.dot_dimension_numbers<[1], [0], [0], [1], [0, 0, 1, 1], [], []>} : vector<16x256xbf16>, vector<256x256xbf16>, vector<16x256xf32> -> vector<16x256xf32>
    %c0_25 = arith.constant 0 : index
    %c256_26 = arith.constant 256 : index
    %37 = vector.load %arg5[%c0_25, %c256_26] : memref<1x512xf32, #tpu.memory_space<vmem>>, vector<1x256xf32>
    %38 = vector.broadcast %37 : vector<1x256xf32> to vector<16x256xf32>
    %39 = arith.addf %36, %38 : vector<16x256xf32>
    %cst_27 = arith.constant 0.000000e+00 : f32
    %40 = vector.broadcast %cst_27 : f32 to vector<16x256xf32>
    %41 = arith.maximumf %39, %40 : vector<16x256xf32>
    %42 = arith.truncf %41 : vector<16x256xf32> to vector<16x256xbf16>
    %c0_28 = arith.constant 0 : index
    %c256_29 = arith.constant 256 : index
    %43 = vector.load %arg6[%c0_28, %c256_29] : memref<256x512xbf16, #tpu.memory_space<vmem>>, vector<256x256xbf16>
    %cst_30 = arith.constant dense<0.000000e+00> : vector<16x256xf32>
    %44 = tpu.matmul %42, %43, %cst_30 {dimension_numbers = #tpu.dot_dimension_numbers<[1], [0], [0], [1], [0, 0, 1, 1], [], []>} : vector<16x256xbf16>, vector<256x256xbf16>, vector<16x256xf32> -> vector<16x256xf32>
    %c0_31 = arith.constant 0 : index
    %c256_32 = arith.constant 256 : index
    %45 = vector.load %arg7[%c0_31, %c256_32] : memref<1x512xf32, #tpu.memory_space<vmem>>, vector<1x256xf32>
    %46 = vector.broadcast %45 : vector<1x256xf32> to vector<16x256xf32>
    %47 = arith.addf %44, %46 : vector<16x256xf32>
    %cst_33 = arith.constant 0.000000e+00 : f32
    %48 = vector.broadcast %cst_33 : f32 to vector<16x256xf32>
    %49 = arith.maximumf %47, %48 : vector<16x256xf32>
    %c0_34 = arith.constant 0 : index
    %c256_35 = arith.constant 256 : index
    %50 = vector.load %arg8[%c0_34, %c256_35] : memref<1x512xf32, #tpu.memory_space<vmem>>, vector<1x256xf32>
    %51 = vector.broadcast %50 : vector<1x256xf32> to vector<16x256xf32>
    %52 = arith.mulf %49, %51 : vector<16x256xf32>
    %cst_36 = arith.constant dense<0.000000e+00> : vector<16xf32>
    %53 = vector.multi_reduction <add>, %52, %cst_36 [1] : vector<16x256xf32> to vector<16xf32>
    %54 = vector.shape_cast %53 : vector<16xf32> to vector<16x1xf32>
    %c0_37 = arith.constant 0 : index
    %c1 = arith.constant 1 : index
    %55 = vector.load %arg9[%c0_37, %c1] : memref<1x2xf32, #tpu.memory_space<vmem>>, vector<1x1xf32>
    %56 = vector.broadcast %55 : vector<1x1xf32> to vector<16x1xf32>
    %57 = arith.addf %54, %56 : vector<16x1xf32>
    %58 = tpu.iota {dimensions = array<i32: 1>} : vector<16x2xi32>
    %c0_i32 = arith.constant 0 : i32
    %59 = vector.broadcast %c0_i32 : i32 to vector<16x2xi32>
    %60 = arith.cmpi eq, %58, %59 : vector<16x2xi32>
    %61 = vector.shape_cast %32 : vector<16x1xf32> to vector<16x1xf32>
    %62 = vector.broadcast %61 : vector<16x1xf32> to vector<16x2xf32>
    %63 = vector.shape_cast %57 : vector<16x1xf32> to vector<16x1xf32>
    %64 = vector.broadcast %63 : vector<16x1xf32> to vector<16x2xf32>
    %65 = arith.select %60, %62, %64 : vector<16x2xi1>, vector<16x2xf32>
    %c0_38 = arith.constant 0 : index
    %c0_39 = arith.constant 0 : index
    %66 = vector.load %arg10[%c0_38, %c0_39] : memref<16x2xf32, #tpu.memory_space<vmem>>, vector<16x2xf32>
    tpu.vector_store %arg10[%c0_38, %c0_39], %65 {strides = array<i32>} : memref<16x2xf32, #tpu.memory_space<vmem>>, vector<16x2xf32>,
    return
  }
  func.func @transform_0(%arg0: i32) -> (i32, i32) {
    %c0_i32 = arith.constant 0 : i32
    %c0_i32_0 = arith.constant 0 : i32
    return %arg0, %c0_i32 : i32, i32
  }
  func.func @transform_1(%arg0: i32) -> (i32, i32) {
    %c0_i32 = arith.constant 0 : i32
    %c0_i32_0 = arith.constant 0 : i32
    %c0_i32_1 = arith.constant 0 : i32
    return %c0_i32, %c0_i32_0 : i32, i32
  }
  func.func @transform_2(%arg0: i32) -> (i32, i32) {
    %c0_i32 = arith.constant 0 : i32
    %c0_i32_0 = arith.constant 0 : i32
    %c0_i32_1 = arith.constant 0 : i32
    return %c0_i32, %c0_i32_0 : i32, i32
  }
  func.func @transform_3(%arg0: i32) -> (i32, i32) {
    %c0_i32 = arith.constant 0 : i32
    %c0_i32_0 = arith.constant 0 : i32
    %c0_i32_1 = arith.constant 0 : i32
    return %c0_i32, %c0_i32_0 : i32, i32
  }
  func.func @transform_4(%arg0: i32) -> (i32, i32) {
    %c0_i32 = arith.constant 0 : i32
    %c0_i32_0 = arith.constant 0 : i32
    %c0_i32_1 = arith.constant 0 : i32
    return %c0_i32, %c0_i32_0 : i32, i32
  }
  func.func @transform_5(%arg0: i32) -> (i32, i32) {
    %c0_i32 = arith.constant 0 : i32
    %c0_i32_0 = arith.constant 0 : i32
    %c0_i32_1 = arith.constant 0 : i32
    return %c0_i32, %c0_i32_0 : i32, i32
  }
  func.func @transform_6(%arg0: i32) -> (i32, i32) {
    %c0_i32 = arith.constant 0 : i32
    %c0_i32_0 = arith.constant 0 : i32
    %c0_i32_1 = arith.constant 0 : i32
    return %c0_i32, %c0_i32_0 : i32, i32
  }
  func.func @transform_7(%arg0: i32) -> (i32, i32) {
    %c0_i32 = arith.constant 0 : i32
    %c0_i32_0 = arith.constant 0 : i32
    %c0_i32_1 = arith.constant 0 : i32
    return %c0_i32, %c0_i32_0 : i32, i32
  }
  func.func @transform_8(%arg0: i32) -> (i32, i32) {
    %c0_i32 = arith.constant 0 : i32
    %c0_i32_0 = arith.constant 0 : i32
    %c0_i32_1 = arith.constant 0 : i32
    return %c0_i32, %c0_i32_0 : i32, i32
  }
  func.func @transform_9(%arg0: i32) -> (i32, i32) {
    %c0_i32 = arith.constant 0 : i32
    %c0_i32_0 = arith.constant 0 : i32
    return %arg0, %c0_i32 : i32, i32
  }
}

</mosaic_0001>

<bundles_post_ra>
// kernel: tpu_custom_call.1
= control target key start
LH: loop header
LB: loop body
LE: loop exit
PB: predicated region body
PF: predicated region fallthrough
CT: control target
= control target key end

     0   :  { %14 = vsyncpa [#allocation3], 0  ;;  %s2000_s0 = inlined_call_operand.hbm [shape: bf16[16,24], index: 0, kind: input, shape index: {}]   ;;  %s2001_s1 = inlined_call_operand.hbm [shape: bf16[24,512], index: 1, kind: input, shape index: {}]   ;;  %s2002_s2 = inlined_call_operand.vmem [shape: f32[1,512], index: 2, kind: input, shape index: {}]   ;;  %s2003_s3 = inlined_call_operand.hbm [shape: bf16[256,512], index: 3, kind: input, shape index: {}]   ;;  %s2004_s4 = inlined_call_operand.vmem [shape: f32[1,512], index: 4, kind: input, shape index: {}]   ;;  %s2005_s5 = inlined_call_operand.hbm [shape: bf16[256,512], index: 5, kind: input, shape index: {}]   ;;  %s2006_s6 = inlined_call_operand.vmem [shape: f32[1,512], index: 6, kind: input, shape index: {}]   ;;  %s2007_s7 = inlined_call_operand.vmem [shape: f32[1,512], index: 7, kind: input, shape index: {}]   ;;  %s2008_s8 = inlined_call_operand.vmem [shape: f32[1,2], index: 8, kind: input, shape index: {}]   ;;  %s2009_s9 = inlined_call_operand.vmem [shape: f32[16,2], index: 9, kind: output, shape index: {}]  }
   0x1   :  { %15 = vsyncpa [#allocation5], 0 }
   0x2   :  { %16 = vsyncpa [#allocation8], 0  ;;  %s1819_s30 = smov [#allocation4]   ;;  %s1725_s13 = scalar_lea.hbm %s2001_s1, 768 }
   0x3   :  { %s34_s10 = sshll.u32 %s1819_s30, 4  ;;  %p1726_p0 = scmp.ne.s32.totalorder %s2001_s1, %s1725_s13  ;;  %s35_s10 = int_to_ptr.vmem [resolvable:$true] %s34_s10 }
   0x4   :  { %p1729_p1 = scmp.lt.u32.totalorder %s1725_s13, %s2001_s1 }
   0x6   :  { %p1731_p2 = pnand %p1729_p1, %p1726_p0 }
   0x8   :  { %1734 = shalt.err (!%p1731_p2)
}
   0x9   :  { %s1735_s18 = scalar_lea.vmem %s35_s10, 768  ;;  %p1740_p4 = scmp.lt.s32.totalorder %s35_s10, %s35_s10 }
   0xa   :  { %p1736_p3 = scmp.ne.s32.totalorder %s35_s10, %s1735_s18  ;;  %p1741_p5 = scmp.lt.s32.totalorder %s1735_s18, %s1735_s18 }
   0xc   :  { %p1742_p6 = por %p1741_p5, %p1740_p4 }
   0xe   :  { %p1743_p7 = pnand %p1742_p6, %p1736_p3 }
  0x10   :  { %1746 = shalt.err (!%p1743_p7)
}
  0x11   :  { %s1820_s19 = smov 256   ;;  %s1821_s20 = smov 16  }
  0x12   :  { %40 = dma.hbm_to_vmem [thread:$0]  %s2001_s1, 768, %s35_s10, [#allocation5], %s1820_s19, %s1820_s19, %s1821_s20  }
  0x13   :  { %s1822_s23 = smov [#allocation2]   ;;  %s1747_s27 = scalar_lea.hbm %s2000_s0, 128 }
  0x14   :  { %s22_s24 = sshll.u32 %s1822_s23, 4  ;;  %p1748_p8 = scmp.ne.s32.totalorder %s2000_s0, %s1747_s27  ;;  %s23_s24 = int_to_ptr.vmem [resolvable:$true] %s22_s24 }
  0x15   :  { %p1751_p9 = scmp.lt.u32.totalorder %s1747_s27, %s2000_s0 }
  0x17   :  { %p1753_p10 = pnand %p1751_p9, %p1748_p8 }
  0x19   :  { %1756 = shalt.err (!%p1753_p10)
}
  0x1a   :  { %s1757_s12 = scalar_lea.vmem %s23_s24, 128  ;;  %p1762_p12 = scmp.lt.s32.totalorder %s23_s24, %s23_s24 }
  0x1b   :  { %p1758_p11 = scmp.ne.s32.totalorder %s23_s24, %s1757_s12  ;;  %p1763_p13 = scmp.lt.s32.totalorder %s1757_s12, %s1757_s12 }
  0x1d   :  { %p1764_p0 = por %p1763_p13, %p1762_p12 }
  0x1f   :  { %p1765_p1 = pnand %p1764_p0, %p1758_p11 }
  0x21   :  { %1768 = shalt.err (!%p1765_p1)
}
  0x22   :  { %s1823_s1 = smov 64   ;;  %s1824_s10 = smov 4  }
  0x23   :  { %28 = dma.hbm_to_vmem [thread:$0]  %s2000_s0, 128, %s23_s24, [#allocation3], %s1823_s1, %s1823_s1, %s1824_s10  }
  0x24   :  { %s1825_s15 = smov [#allocation6]   ;;  %s1826_s17 = smov [#allocation7]  }
  0x25   :  { %s48_s16 = sshll.u32 %s1825_s15, 4  ;;  %s62_s18 = sshll.u32 %s1826_s17, 4  ;;  %s49_s16 = int_to_ptr.vmem [resolvable:$true] %s48_s16  ;;  %s1906_s18 = int_to_ptr.vmem [resolvable:$true] %s62_s18 }
  0x26   :  { %s1769_s23 = scalar_lea.hbm %s2003_s3, 8192 }
  0x27   :  { %p1770_p2 = scmp.ne.s32.totalorder %s2003_s3, %s1769_s23  ;;  %p1773_p3 = scmp.lt.u32.totalorder %s1769_s23, %s2003_s3 }
  0x29   :  { %p1775_p4 = pnand %p1773_p3, %p1770_p2 }
  0x2b   :  { %1778 = shalt.err (!%p1775_p4)
}
  0x2c   :  { %s1779_s0 = scalar_lea.vmem %s49_s16, 8192  ;;  %p1784_p6 = scmp.lt.s32.totalorder %s49_s16, %s49_s16 }
  0x2d   :  { %p1780_p5 = scmp.ne.s32.totalorder %s49_s16, %s1779_s0  ;;  %p1785_p7 = scmp.lt.s32.totalorder %s1779_s0, %s1779_s0 }
  0x2f   :  { %p1786_p8 = por %p1785_p7, %p1784_p6 }
  0x31   :  { %p1787_p9 = pnand %p1786_p8, %p1780_p5 }
  0x33   :  { %1790 = shalt.err (!%p1787_p9)
}
  0x34   :  { %54 = dma.hbm_to_vmem [thread:$0]  %s2003_s3, 8192, %s49_s16, [#allocation5], %s1820_s19, %s1820_s19, %s1821_s20  }
  0x35   :  { %s1791_s12 = scalar_lea.hbm %s2005_s5, 8192 }
  0x36   :  { %p1792_p10 = scmp.ne.s32.totalorder %s2005_s5, %s1791_s12  ;;  %p1795_p11 = scmp.lt.u32.totalorder %s1791_s12, %s2005_s5 }
  0x38   :  { %p1797_p12 = pnand %p1795_p11, %p1792_p10 }
  0x3a   :  { %1800 = shalt.err (!%p1797_p12)
}
  0x3b   :  { %s1801_s15 = scalar_lea.vmem %s1906_s18, 8192  ;;  %p1806_p0 = scmp.lt.s32.totalorder %s1906_s18, %s1906_s18 }
  0x3c   :  { %p1802_p13 = scmp.ne.s32.totalorder %s1906_s18, %s1801_s15  ;;  %p1807_p1 = scmp.lt.s32.totalorder %s1801_s15, %s1801_s15 }
  0x3e   :  { %p1808_p2 = por %p1807_p1, %p1806_p0 }
  0x40   :  { %p1809_p3 = pnand %p1808_p2, %p1802_p13 }
  0x42   :  { %1812 = shalt.err (!%p1809_p3)
}
  0x43   :  { %68 = dma.hbm_to_vmem [thread:$0]  %s2005_s5, 8192, %s1906_s18, [#allocation8], %s1820_s19, %s1820_s19, %s1821_s20  }
  0x44   :  { %1813 = dma.done.wait [#allocation3], 128  }
  0x45   :  { %1814 = vsyncadd [#allocation3], 4294967168 }
  0x46   :  { %1815 = dma.done.wait [#allocation5], 8960  }
  0x47   :  { %1816 = vsyncadd [#allocation5], 4294958336 }
  0x48   :  { %1817 = dma.done.wait [#allocation8], 8192  }
  0x49   :  { %1818 = vsyncadd [#allocation8], 4294959104  ;;  %v1827_v0 = vmov 0   ;;  %v1522_v1 = vld [vmem:[#allocation4 + $0x4] ss:$16 sps:$4 sm:$0xff]   ;;  %vm157_vm0 = vcmask 1043456  }
  0x4a   :  { %202 = vmatprep.mubr.bf16.mxu0 %v1827_v0  ;;  %245 = vmatprep.mubr.bf16.mxu1 %v1827_v0  ;;  %v1524_v2 = vld [vmem:[#allocation4] ss:$16 sps:$4 sm:$0xff]   ;;  %v1528_v6 = vld [vmem:[#allocation4 + $0xc] ss:$16 sps:$4 sm:$0xff]   ;;  %v1530_v7 = vld [vmem:[#allocation4 + $0x8] ss:$16 sps:$4 sm:$0xff]  }
  0x4b   :  { %1518 = vset.pattern.permute.xlu0 %v1827_v0  ;;  %1519 = vset.pattern.permute.xlu1 %v1827_v0  ;;  %v94_v3 = vld [vmem:[#allocation4 + $0x20] sm:$0xff]  ;;  %v95_v9 = vld [vmem:[#allocation4 + $0x28] sm:$0xff]  ;;  %v1527_v13 = vld [vmem:[#allocation2] sm:$0xff]   ;;  %vm153_vm1 = vcmask 195584   ;;  %vm1356_vm3 = vcmask 15360  }
  0x4c   :  { %170 = vmatprep.subr.bf16.mxu0 %v1522_v1  ;;  %v1372_v4 = vcombine.high %v94_v3, %v94_v3  ;;  %v1371_v5 = vcombine.low %v94_v3, %v94_v3  ;;  %213 = vmatprep.subr.bf16.mxu1 %v1528_v6  ;;  %v1374_v10 = vcombine.high %v95_v9, %v95_v9  ;;  %v1535_v12 = vld [vmem:[#allocation6 + $0x4] ss:$16 sps:$4 sm:$0xff]   ;;  %v1533_v15 = vld [vmem:[#allocation6] ss:$16 sps:$4 sm:$0xff]   ;;  %v1583_v46 = vld [vmem:[#allocation6 + $0xc] ss:$16 sps:$4 sm:$0xff]  }
  0x4d   :  { %171 = vmatpush1.bf16.msra.mxu0 %v1524_v2  ;;  %v1373_v11 = vcombine.low %v95_v9, %v95_v9  ;;  %214 = vmatpush1.bf16.msra.mxu1 %v1530_v7  ;;  %v1538_v16 = vld [vmem:[#allocation6 + $0x24] ss:$16 sps:$4 sm:$0xff]   ;;  %v1536_v17 = vld [vmem:[#allocation6 + $0x20] ss:$16 sps:$4 sm:$0xff]  }
  0x4e   :  { %1375 = vmatprep.subr.msk.bf16.mxu0 %vm157_vm0, %v1372_v4  ;;  %v159_v8 = vsel %vm157_vm0, %v1371_v5, 0  ;;  %1377 = vmatprep.subr.msk.bf16.mxu1 %vm157_vm0, %v1374_v10  ;;  %v1541_v18 = vld [vmem:[#allocation6 + $0x44] ss:$16 sps:$4 sm:$0xff]   ;;  %v1539_v19 = vld [vmem:[#allocation6 + $0x40] ss:$16 sps:$4 sm:$0xff]   ;;  %v98_v4 = vlaneseq }
  0x4f   :  { %v165_v14 = vsel %vm157_vm0, %v1373_v11, 0  ;;  %v1544_v20 = vld [vmem:[#allocation6 + $0x64] ss:$16 sps:$4 sm:$0xff]   ;;  %v1542_v21 = vld [vmem:[#allocation6 + $0x60] ss:$16 sps:$4 sm:$0xff]  }
  0x50   :  { %v1547_v22 = vld [vmem:[#allocation6 + $0x84] ss:$16 sps:$4 sm:$0xff]   ;;  %v1545_v23 = vld [vmem:[#allocation6 + $0x80] ss:$16 sps:$4 sm:$0xff]   ;;  %v99_v7 = vshrl.u32 %v98_v4, 7 }
  0x51   :  { %173 = vmatpush1.bf16.msra.mxu0 %v159_v8  ;;  %216 = vmatpush1.bf16.msra.mxu1 %v165_v14  ;;  %v1550_v24 = vld [vmem:[#allocation6 + $0xa4] ss:$16 sps:$4 sm:$0xff]   ;;  %v1548_v25 = vld [vmem:[#allocation6 + $0xa0] ss:$16 sps:$4 sm:$0xff]   ;;  %v96_v11 = vld [vmem:[%s2002_s2] sm:$0xf] }
  0x52   :  { %470 = vmatprep.subr.bf16.mxu0 %v1535_v12  ;;  %v1553_v26 = vld [vmem:[#allocation6 + $0xc4] ss:$16 sps:$4 sm:$0xff]   ;;  %v1551_v27 = vld [vmem:[#allocation6 + $0xc0] ss:$16 sps:$4 sm:$0xff]   ;;  %v1948_v10 = vsub.s32 0, %v99_v7  ;;  %v1953_v12 = vsub.s32 1, %v99_v7 }
  0x53   :  { %v1556_v28 = vld [vmem:[#allocation6 + $0xe4] ss:$16 sps:$4 sm:$0xff]   ;;  %v1554_v29 = vld [vmem:[#allocation6 + $0xe0] ss:$16 sps:$4 sm:$0xff]  }
  0x54   :  { %1376 = vmatmul.mubr.msk.bf16.vlgmr.msra.gmra.mrb[0].mxu0 %vm153_vm1, %v1527_v13  ;;  %1378 = vmatmul.mubr.msk.bf16.vlgmr.msra.gmra.mrb[0].mxu1 %vm153_vm1, %v1527_v13  ;;  %v1559_v30 = vld [vmem:[#allocation6 + $0x104] ss:$16 sps:$4 sm:$0xff]   ;;  %v1557_v31 = vld [vmem:[#allocation6 + $0x100] ss:$16 sps:$4 sm:$0xff]  }
  0x55   :  { %471 = vmatpush1.bf16.msra.mxu0 %v1533_v15  ;;  %v1562_v32 = vld [vmem:[#allocation6 + $0x124] ss:$16 sps:$4 sm:$0xff]   ;;  %v1560_v33 = vld [vmem:[#allocation6 + $0x120] ss:$16 sps:$4 sm:$0xff]   ;;  %v108_v15 = vsub.s32 2, %v99_v7 }
  0x56   :  { %472 = vmatprep.subr.bf16.mxu0 %v1538_v16  ;;  %v1565_v34 = vld [vmem:[#allocation6 + $0x144] ss:$16 sps:$4 sm:$0xff]   ;;  %v1563_v35 = vld [vmem:[#allocation6 + $0x140] ss:$16 sps:$4 sm:$0xff]   ;;  %v101_v16 = vrot.slane %v96_v11, %v1948_v10 }
  0x57   :  { %v1568_v36 = vld [vmem:[#allocation6 + $0x164] ss:$16 sps:$4 sm:$0xff]   ;;  %v1566_v37 = vld [vmem:[#allocation6 + $0x160] ss:$16 sps:$4 sm:$0xff]  }
  0x58   :  { %v1571_v38 = vld [vmem:[#allocation6 + $0x184] ss:$16 sps:$4 sm:$0xff]   ;;  %v1569_v39 = vld [vmem:[#allocation6 + $0x180] ss:$16 sps:$4 sm:$0xff]  }
  0x59   :  { %473 = vmatpush1.bf16.msra.mxu0 %v1536_v17  ;;  %v1574_v40 = vld [vmem:[#allocation6 + $0x1a4] ss:$16 sps:$4 sm:$0xff]   ;;  %v1572_v41 = vld [vmem:[#allocation6 + $0x1a0] ss:$16 sps:$4 sm:$0xff]   ;;  %v112_v17 = vsub.s32 3, %v99_v7 }
  0x5a   :  { %474 = vmatprep.subr.bf16.mxu0 %v1541_v18  ;;  %v1577_v42 = vld [vmem:[#allocation6 + $0x1c4] ss:$16 sps:$4 sm:$0xff]   ;;  %v1575_v43 = vld [vmem:[#allocation6 + $0x1c0] ss:$16 sps:$4 sm:$0xff]   ;;  %v105_v18 = vrot.slane %v96_v11, %v1953_v12  ;;  %v1611_v7 = vld [vmem:[#allocation6 + $0x148] ss:$16 sps:$4 sm:$0xff]  }
  0x5b   :  { %v1580_v44 = vld [vmem:[#allocation6 + $0x1e4] ss:$16 sps:$4 sm:$0xff]   ;;  %v1578_v45 = vld [vmem:[#allocation6 + $0x1e0] ss:$16 sps:$4 sm:$0xff]  }
  0x5c   :  { %v1629_v47 = vld [vmem:[#allocation7] ss:$16 sps:$4 sm:$0xff]   ;;  %v1631_v48 = vld [vmem:[#allocation7 + $0x4] ss:$16 sps:$4 sm:$0xff]  }
  0x5d   :  { %475 = vmatpush1.bf16.msra.mxu0 %v1539_v19  ;;  %v1634_v49 = vld [vmem:[#allocation7 + $0x24] ss:$16 sps:$4 sm:$0xff]   ;;  %723 = vmatprep.subr.bf16.mxu1 %v1631_v48  ;;  %v1632_v50 = vld [vmem:[#allocation7 + $0x20] ss:$16 sps:$4 sm:$0xff]   ;;  %v1586_v48 = vld [vmem:[#allocation6 + $0x2c] ss:$16 sps:$4 sm:$0xff]  }
  0x5e   :  { %476 = vmatprep.subr.bf16.mxu0 %v1544_v20  ;;  %724 = vmatpush1.bf16.msra.mxu1 %v1629_v47  ;;  %v1637_v51 = vld [vmem:[#allocation7 + $0x44] ss:$16 sps:$4 sm:$0xff]   ;;  %v1635_v52 = vld [vmem:[#allocation7 + $0x40] ss:$16 sps:$4 sm:$0xff]  }
  0x5f   :  { %725 = vmatprep.subr.bf16.mxu1 %v1634_v49  ;;  %v1640_v53 = vld [vmem:[#allocation7 + $0x64] ss:$16 sps:$4 sm:$0xff]   ;;  %v1638_v54 = vld [vmem:[#allocation7 + $0x60] ss:$16 sps:$4 sm:$0xff]  }
  0x60   :  { %v1643_v55 = vld [vmem:[#allocation7 + $0x84] ss:$16 sps:$4 sm:$0xff]   ;;  %v1641_v56 = vld [vmem:[#allocation7 + $0x80] ss:$16 sps:$4 sm:$0xff]  }
  0x61   :  { %477 = vmatpush1.bf16.msra.mxu0 %v1542_v21  ;;  %v1646_v57 = vld [vmem:[#allocation7 + $0xa4] ss:$16 sps:$4 sm:$0xff]   ;;  %v1644_v58 = vld [vmem:[#allocation7 + $0xa0] ss:$16 sps:$4 sm:$0xff]   ;;  %v109_v21 = vrot.slane %v96_v11, %v108_v15  ;;  %v1620_v15 = vld [vmem:[#allocation6 + $0x1a8] ss:$16 sps:$4 sm:$0xff]  }
  0x62   :  { %478 = vmatprep.subr.bf16.mxu0 %v1547_v22  ;;  %726 = vmatpush1.bf16.msra.mxu1 %v1632_v50  ;;  %v1649_v59 = vld [vmem:[#allocation7 + $0xc4] ss:$16 sps:$4 sm:$0xff]   ;;  %v1647_v60 = vld [vmem:[#allocation7 + $0xc0] ss:$16 sps:$4 sm:$0xff]  }
  0x63   :  { %727 = vmatprep.subr.bf16.mxu1 %v1637_v51  ;;  %v1652_v61 = vld [vmem:[#allocation7 + $0xe4] ss:$16 sps:$4 sm:$0xff]   ;;  %v1650_v62 = vld [vmem:[#allocation7 + $0xe0] ss:$16 sps:$4 sm:$0xff]  }
  0x64   :  { %v1655_v63 = vld [vmem:[#allocation7 + $0x104] ss:$16 sps:$4 sm:$0xff]   ;;  %v1653_v0 = vld [vmem:[#allocation7 + $0x100] ss:$16 sps:$4 sm:$0xff]  }
  0x65   :  { %479 = vmatpush1.bf16.msra.mxu0 %v1545_v23  ;;  %v1658_v1 = vld [vmem:[#allocation7 + $0x124] ss:$16 sps:$4 sm:$0xff]   ;;  %v1656_v2 = vld [vmem:[#allocation7 + $0x120] ss:$16 sps:$4 sm:$0xff]  }
  0x66   :  { %480 = vmatprep.subr.bf16.mxu0 %v1550_v24  ;;  %728 = vmatpush1.bf16.msra.mxu1 %v1635_v52  ;;  %v1661_v3 = vld [vmem:[#allocation7 + $0x144] ss:$16 sps:$4 sm:$0xff]   ;;  %v1659_v5 = vld [vmem:[#allocation7 + $0x140] ss:$16 sps:$4 sm:$0xff]   ;;  %v113_v24 = vrot.slane %v96_v11, %v112_v17  ;;  %v1584_v52 = vld [vmem:[#allocation6 + $0x28] ss:$16 sps:$4 sm:$0xff]  }
  0x67   :  { %729 = vmatprep.subr.bf16.mxu1 %v1640_v53  ;;  %v1664_v6 = vld [vmem:[#allocation7 + $0x164] ss:$16 sps:$4 sm:$0xff]   ;;  %v1662_v8 = vld [vmem:[#allocation7 + $0x160] ss:$16 sps:$4 sm:$0xff]   ;;  %v1589_v53 = vld [vmem:[#allocation6 + $0x4c] ss:$16 sps:$4 sm:$0xff]  }
  0x68   :  { %v1667_v9 = vld [vmem:[#allocation7 + $0x184] ss:$16 sps:$4 sm:$0xff]   ;;  %v1665_v13 = vld [vmem:[#allocation7 + $0x180] ss:$16 sps:$4 sm:$0xff]   ;;  %v1619_v11 = vld [vmem:[#allocation6 + $0x18c] ss:$16 sps:$4 sm:$0xff]  }
  0x69   :  { %481 = vmatpush1.bf16.msra.mxu0 %v1548_v25  ;;  %v1670_v14 = vld [vmem:[#allocation7 + $0x1a4] ss:$16 sps:$4 sm:$0xff]   ;;  %v1668_v19 = vld [vmem:[#allocation7 + $0x1a0] ss:$16 sps:$4 sm:$0xff]   ;;  %v1623_v17 = vld [vmem:[#allocation6 + $0x1c8] ss:$16 sps:$4 sm:$0xff]  }
  0x6a   :  { %482 = vmatprep.subr.bf16.mxu0 %v1553_v26  ;;  %730 = vmatpush1.bf16.msra.mxu1 %v1638_v54  ;;  %v1587_v54 = vld [vmem:[#allocation6 + $0x48] ss:$16 sps:$4 sm:$0xff]  }
  0x6b   :  { %731 = vmatprep.subr.bf16.mxu1 %v1643_v55  ;;  %v1592_v55 = vld [vmem:[#allocation6 + $0x6c] ss:$16 sps:$4 sm:$0xff]  }
  0x6d   :  { %483 = vmatpush1.bf16.msra.mxu0 %v1551_v27 }
  0x6e   :  { %484 = vmatprep.subr.bf16.mxu0 %v1556_v28  ;;  %732 = vmatpush1.bf16.msra.mxu1 %v1641_v56  ;;  %v1590_v56 = vld [vmem:[#allocation6 + $0x68] ss:$16 sps:$4 sm:$0xff]  }
  0x6f   :  { %733 = vmatprep.subr.bf16.mxu1 %v1646_v57  ;;  %v1595_v57 = vld [vmem:[#allocation6 + $0x8c] ss:$16 sps:$4 sm:$0xff]  }
  0x71   :  { %485 = vmatpush1.bf16.msra.mxu0 %v1554_v29 }
  0x72   :  { %486 = vmatprep.subr.bf16.mxu0 %v1559_v30  ;;  %734 = vmatpush1.bf16.msra.mxu1 %v1644_v58  ;;  %v1593_v58 = vld [vmem:[#allocation6 + $0x88] ss:$16 sps:$4 sm:$0xff]  }
  0x73   :  { %735 = vmatprep.subr.bf16.mxu1 %v1649_v59  ;;  %v1598_v59 = vld [vmem:[#allocation6 + $0xac] ss:$16 sps:$4 sm:$0xff]  }
  0x75   :  { %487 = vmatpush1.bf16.msra.mxu0 %v1557_v31 }
  0x76   :  { %488 = vmatprep.subr.bf16.mxu0 %v1562_v32  ;;  %736 = vmatpush1.bf16.msra.mxu1 %v1647_v60  ;;  %v1596_v60 = vld [vmem:[#allocation6 + $0xa8] ss:$16 sps:$4 sm:$0xff]  }
  0x77   :  { %737 = vmatprep.subr.bf16.mxu1 %v1652_v61  ;;  %v1601_v61 = vld [vmem:[#allocation6 + $0xcc] ss:$16 sps:$4 sm:$0xff]  }
  0x79   :  { %489 = vmatpush1.bf16.msra.mxu0 %v1560_v33 }
  0x7a   :  { %490 = vmatprep.subr.bf16.mxu0 %v1565_v34  ;;  %738 = vmatpush1.bf16.msra.mxu1 %v1650_v62  ;;  %v1599_v62 = vld [vmem:[#allocation6 + $0xc8] ss:$16 sps:$4 sm:$0xff]  }
  0x7b   :  { %739 = vmatprep.subr.bf16.mxu1 %v1655_v63  ;;  %v1604_v63 = vld [vmem:[#allocation6 + $0xec] ss:$16 sps:$4 sm:$0xff]  }
  0x7d   :  { %491 = vmatpush1.bf16.msra.mxu0 %v1563_v35 }
  0x7e   :  { %492 = vmatprep.subr.bf16.mxu0 %v1568_v36  ;;  %740 = vmatpush1.bf16.msra.mxu1 %v1653_v0  ;;  %v1602_v0 = vld [vmem:[#allocation6 + $0xe8] ss:$16 sps:$4 sm:$0xff]  }
  0x7f   :  { %741 = vmatprep.subr.bf16.mxu1 %v1658_v1  ;;  %v1607_v1 = vld [vmem:[#allocation6 + $0x10c] ss:$16 sps:$4 sm:$0xff]  }
  0x81   :  { %493 = vmatpush1.bf16.msra.mxu0 %v1566_v37 }
  0x82   :  { %494 = vmatprep.subr.bf16.mxu0 %v1571_v38  ;;  %742 = vmatpush1.bf16.msra.mxu1 %v1656_v2  ;;  %v1605_v2 = vld [vmem:[#allocation6 + $0x108] ss:$16 sps:$4 sm:$0xff]  }
  0x83   :  { %743 = vmatprep.subr.bf16.mxu1 %v1661_v3  ;;  %v1610_v3 = vld [vmem:[#allocation6 + $0x12c] ss:$16 sps:$4 sm:$0xff]  }
  0x85   :  { %495 = vmatpush1.bf16.msra.mxu0 %v1569_v39 }
  0x86   :  { %496 = vmatprep.subr.bf16.mxu0 %v1574_v40  ;;  %744 = vmatpush1.bf16.msra.mxu1 %v1659_v5  ;;  %v1608_v5 = vld [vmem:[#allocation6 + $0x128] ss:$16 sps:$4 sm:$0xff]  }
  0x87   :  { %745 = vmatprep.subr.bf16.mxu1 %v1664_v6  ;;  %v1613_v6 = vld [vmem:[#allocation6 + $0x14c] ss:$16 sps:$4 sm:$0xff]  }
  0x89   :  { %497 = vmatpush1.bf16.msra.mxu0 %v1572_v41 }
  0x8a   :  { %498 = vmatprep.subr.bf16.mxu0 %v1577_v42  ;;  %746 = vmatpush1.bf16.msra.mxu1 %v1662_v8  ;;  %v1616_v8 = vld [vmem:[#allocation6 + $0x16c] ss:$16 sps:$4 sm:$0xff]  }
  0x8b   :  { %747 = vmatprep.subr.bf16.mxu1 %v1667_v9  ;;  %v1614_v9 = vld [vmem:[#allocation6 + $0x168] ss:$16 sps:$4 sm:$0xff]  }
  0x8d   :  { %499 = vmatpush1.bf16.msra.mxu0 %v1575_v43 }
  0x8e   :  { %500 = vmatprep.subr.bf16.mxu0 %v1580_v44  ;;  %748 = vmatpush1.bf16.msra.mxu1 %v1665_v13  ;;  %v1617_v13 = vld [vmem:[#allocation6 + $0x188] ss:$16 sps:$4 sm:$0xff]  }
  0x8f   :  { %749 = vmatprep.subr.bf16.mxu1 %v1670_v14  ;;  %v1622_v14 = vld [vmem:[#allocation6 + $0x1ac] ss:$16 sps:$4 sm:$0xff]  }
  0x91   :  { %501 = vmatpush1.bf16.msra.mxu0 %v1578_v45 }
  0x92   :  { %1007 = vmatprep.subr.bf16.mxu0 %v1583_v46  ;;  %750 = vmatpush1.bf16.msra.mxu1 %v1668_v19  ;;  %v1581_v46 = vld [vmem:[#allocation6 + $0x8] ss:$16 sps:$4 sm:$0xff]  }
  0x93   :  { %v1626_v19 = vld [vmem:[#allocation6 + $0x1e8] ss:$16 sps:$4 sm:$0xff]  }
 0x127   :  { %v204_v20 = vpop.f32.mrb[0].mxu0  ;;  %v247_v29 = vpop.f32.mrb[0].mxu1 }
 0x128   :  { %v205_v22 = vadd.f32 %v204_v20, %v101_v16  ;;  %v206_v23 = vpop.f32.mrb[1].mxu0  ;;  %v248_v31 = vadd.f32 %v247_v29, %v109_v21  ;;  %v249_v32 = vpop.f32.mrb[1].mxu1  ;;  %v1673_v20 = vld [vmem:[#allocation7 + $0x1c4] ss:$16 sps:$4 sm:$0xff]  }
 0x129   :  { %v207_v25 = vadd.f32 %v206_v23, %v105_v18  ;;  %v208_v26 = vpop.f32.mrb[2].mxu0  ;;  %v250_v35 = vadd.f32 %v249_v32, %v113_v24  ;;  %v251_v36 = vpop.f32.mrb[2].mxu1  ;;  %751 = vmatprep.subr.bf16.mxu1 %v1673_v20  ;;  %v1674_v23 = vld [vmem:[#allocation7 + $0x1e0] ss:$16 sps:$4 sm:$0xff]  }
 0x12a   :  { %v209_v27 = vadd.f32 %v208_v26, %v101_v16  ;;  %v210_v28 = vpop.f32.mrb[3].mxu0  ;;  %v256_v33 = vmax.f32 %v205_v22, 0.0  ;;  %v258_v39 = vmax.f32 %v248_v31, 0.0  ;;  %v252_v40 = vadd.f32 %v251_v36, %v109_v21  ;;  %v253_v41 = vpop.f32.mrb[3].mxu1  ;;  %v1625_v16 = vld [vmem:[#allocation6 + $0x1cc] ss:$16 sps:$4 sm:$0xff]  }
 0x12b   :  { %v211_v30 = vadd.f32 %v210_v28, %v105_v18  ;;  %v257_v37 = vmax.f32 %v207_v25, 0.0  ;;  %v259_v43 = vmax.f32 %v250_v35, 0.0  ;;  %v254_v44 = vadd.f32 %v253_v41, %v113_v24  ;;  %v1628_v18 = vld [vmem:[#allocation6 + $0x1ec] ss:$16 sps:$4 sm:$0xff]   ;;  %v1671_v21 = vld [vmem:[#allocation7 + $0x1c0] ss:$16 sps:$4 sm:$0xff]  }
 0x12c   :  { %v260_v34 = vmax.f32 %v209_v27, 0.0  ;;  %v262_v47 = vmax.f32 %v252_v40, 0.0  ;;  %752 = vmatpush1.bf16.msra.mxu1 %v1671_v21  ;;  %v1676_v22 = vld [vmem:[#allocation7 + $0x1e4] ss:$16 sps:$4 sm:$0xff]   ;;  %v1679_v24 = vld [vmem:[#allocation7 + $0xc] ss:$16 sps:$4 sm:$0xff]  }
 0x12d   :  { %v261_v38 = vmax.f32 %v211_v30, 0.0  ;;  %v263_v49 = vmax.f32 %v254_v44, 0.0  ;;  %753 = vmatprep.subr.bf16.mxu1 %v1676_v22  ;;  %v298_v25 = vld [vmem:[%s2004_s4] sm:$0x3] }
 0x12e   :  { %v264_v42 = vpack.c.bf16 %v260_v34, %v256_v33  ;;  %v1957_v50 = vpack.c.bf16 %v262_v47, %v258_v39  ;;  %v303_v26 = vrot.slane %v298_v25, %v1948_v10  ;;  %v307_v27 = vrot.slane %v298_v25, %v1953_v12  ;;  %v1680_v44 = vld [vmem:[#allocation7 + $0x28] ss:$16 sps:$4 sm:$0xff]   ;;  %v1688_v47 = vld [vmem:[#allocation7 + $0x6c] ss:$16 sps:$4 sm:$0xff]  }
 0x12f   :  { %v265_v45 = vpack.c.bf16 %v261_v38, %v257_v37  ;;  %v802_v51 = vpack.c.bf16 %v263_v49, %v259_v43  ;;  %v1682_v43 = vld [vmem:[#allocation7 + $0x2c] ss:$16 sps:$4 sm:$0xff]   ;;  %v1722_v22 = vld [vmem:[#allocation7 + $0x1e8] ss:$16 sps:$4 sm:$0xff]  }
 0x130   :  { %754 = vmatpush1.bf16.msra.mxu1 %v1674_v23  ;;  %v1691_v49 = vld [vmem:[#allocation7 + $0x8c] ss:$16 sps:$4 sm:$0xff]  }
 0x131   :  { %502 = vmatprep.mubr.bf16.mxu0 %v265_v45  ;;  %1260 = vmatprep.subr.bf16.mxu1 %v1679_v24  ;;  %v1685_v45 = vld [vmem:[#allocation7 + $0x4c] ss:$16 sps:$4 sm:$0xff]  }
 0x132   :  { %503 = vmatmul.mubr.bf16.vlgmr.msra.gmra.mrb[4].mxu0 %v264_v42  ;;  %v1677_v42 = vld [vmem:[#allocation7 + $0x8] ss:$16 sps:$4 sm:$0xff]  }
 0x133   :  { %1008 = vmatpush1.bf16.msra.mxu0 %v1581_v46  ;;  %1039 = vmatprep.mubr.bf16.mxu0 %v802_v51  ;;  %v1683_v46 = vld [vmem:[#allocation7 + $0x48] ss:$16 sps:$4 sm:$0xff]   ;;  %v1694_v51 = vld [vmem:[#allocation7 + $0xac] ss:$16 sps:$4 sm:$0xff]  }
 0x134   :  { %1009 = vmatprep.subr.bf16.mxu0 %v1586_v48  ;;  %v1686_v48 = vld [vmem:[#allocation7 + $0x68] ss:$16 sps:$4 sm:$0xff]  }
 0x137   :  { %1010 = vmatpush1.bf16.msra.mxu0 %v1584_v52  ;;  %v1692_v52 = vld [vmem:[#allocation7 + $0xa8] ss:$16 sps:$4 sm:$0xff]  }
 0x138   :  { %1011 = vmatprep.subr.bf16.mxu0 %v1589_v53  ;;  %v1697_v53 = vld [vmem:[#allocation7 + $0xcc] ss:$16 sps:$4 sm:$0xff]  }
 0x13b   :  { %1012 = vmatpush1.bf16.msra.mxu0 %v1587_v54  ;;  %v1695_v54 = vld [vmem:[#allocation7 + $0xc8] ss:$16 sps:$4 sm:$0xff]  }
 0x13c   :  { %1013 = vmatprep.subr.bf16.mxu0 %v1592_v55  ;;  %v1700_v55 = vld [vmem:[#allocation7 + $0xec] ss:$16 sps:$4 sm:$0xff]  }
 0x13f   :  { %1014 = vmatpush1.bf16.msra.mxu0 %v1590_v56  ;;  %v1698_v56 = vld [vmem:[#allocation7 + $0xe8] ss:$16 sps:$4 sm:$0xff]  }
 0x140   :  { %1015 = vmatprep.subr.bf16.mxu0 %v1595_v57  ;;  %v1703_v57 = vld [vmem:[#allocation7 + $0x10c] ss:$16 sps:$4 sm:$0xff]  }
 0x143   :  { %1016 = vmatpush1.bf16.msra.mxu0 %v1593_v58  ;;  %v1701_v58 = vld [vmem:[#allocation7 + $0x108] ss:$16 sps:$4 sm:$0xff]  }
 0x144   :  { %1017 = vmatprep.subr.bf16.mxu0 %v1598_v59  ;;  %v1706_v59 = vld [vmem:[#allocation7 + $0x12c] ss:$16 sps:$4 sm:$0xff]  }
 0x147   :  { %1018 = vmatpush1.bf16.msra.mxu0 %v1596_v60  ;;  %v1704_v60 = vld [vmem:[#allocation7 + $0x128] ss:$16 sps:$4 sm:$0xff]  }
 0x148   :  { %1019 = vmatprep.subr.bf16.mxu0 %v1601_v61  ;;  %v1709_v61 = vld [vmem:[#allocation7 + $0x14c] ss:$16 sps:$4 sm:$0xff]  }
 0x14b   :  { %1020 = vmatpush1.bf16.msra.mxu0 %v1599_v62  ;;  %v1707_v62 = vld [vmem:[#allocation7 + $0x148] ss:$16 sps:$4 sm:$0xff]  }
 0x14c   :  { %1021 = vmatprep.subr.bf16.mxu0 %v1604_v63  ;;  %v1712_v63 = vld [vmem:[#allocation7 + $0x16c] ss:$16 sps:$4 sm:$0xff]  }
 0x14f   :  { %1022 = vmatpush1.bf16.msra.mxu0 %v1602_v0  ;;  %v1710_v0 = vld [vmem:[#allocation7 + $0x168] ss:$16 sps:$4 sm:$0xff]  }
 0x150   :  { %1023 = vmatprep.subr.bf16.mxu0 %v1607_v1  ;;  %v1715_v1 = vld [vmem:[#allocation7 + $0x18c] ss:$16 sps:$4 sm:$0xff]  }
 0x153   :  { %1024 = vmatpush1.bf16.msra.mxu0 %v1605_v2  ;;  %v1713_v2 = vld [vmem:[#allocation7 + $0x188] ss:$16 sps:$4 sm:$0xff]  }
 0x154   :  { %1025 = vmatprep.subr.bf16.mxu0 %v1610_v3  ;;  %v1718_v3 = vld [vmem:[#allocation7 + $0x1ac] ss:$16 sps:$4 sm:$0xff]  }
 0x157   :  { %1026 = vmatpush1.bf16.msra.mxu0 %v1608_v5  ;;  %v835_v5 = vld [vmem:[%s2004_s4 + $0x2] sm:$0x3] }
 0x158   :  { %1027 = vmatprep.subr.bf16.mxu0 %v1613_v6  ;;  %v1716_v6 = vld [vmem:[#allocation7 + $0x1a8] ss:$16 sps:$4 sm:$0xff]  }
 0x15b   :  { %1028 = vmatpush1.bf16.msra.mxu0 %v1611_v7  ;;  %v840_v7 = vrot.slane %v835_v5, %v1948_v10 }
 0x15c   :  { %1029 = vmatprep.subr.bf16.mxu0 %v1616_v8  ;;  %v1721_v8 = vld [vmem:[#allocation7 + $0x1cc] ss:$16 sps:$4 sm:$0xff]  }
 0x15f   :  { %1030 = vmatpush1.bf16.msra.mxu0 %v1614_v9  ;;  %v844_v9 = vrot.slane %v835_v5, %v1953_v12 }
 0x160   :  { %1031 = vmatprep.subr.bf16.mxu0 %v1619_v11 }
 0x163   :  { %1032 = vmatpush1.bf16.msra.mxu0 %v1617_v13  ;;  %v1719_v13 = vld [vmem:[#allocation7 + $0x1c8] ss:$16 sps:$4 sm:$0xff]  }
 0x164   :  { %1033 = vmatprep.subr.bf16.mxu0 %v1622_v14 }
 0x167   :  { %1034 = vmatpush1.bf16.msra.mxu0 %v1620_v15 }
 0x168   :  { %1035 = vmatprep.subr.bf16.mxu0 %v1625_v16  ;;  %v1724_v16 = vld [vmem:[#allocation7 + $0x1ec] ss:$16 sps:$4 sm:$0xff]  }
 0x16b   :  { %1036 = vmatpush1.bf16.msra.mxu0 %v1623_v17 }
 0x16c   :  { %1037 = vmatprep.subr.bf16.mxu0 %v1628_v18 }
 0x16f   :  { %1038 = vmatpush1.bf16.msra.mxu0 %v1626_v19 }
 0x172   :  { %1040 = vmatmul.mubr.bf16.vlgmr.msra.gmra.mrb[8].mxu0 %v1957_v50  ;;  %v1689_v50 = vld [vmem:[#allocation7 + $0x88] ss:$16 sps:$4 sm:$0xff]  }
 0x205   :  { %v504_v28 = vpop.f32.mrb[4].mxu0 }
 0x206   :  { %v505_v29 = vadd.f32 %v504_v28, %v303_v26  ;;  %v506_v30 = vpop.f32.mrb[5].mxu0 }
 0x207   :  { %v507_v31 = vadd.f32 %v506_v30, %v307_v27  ;;  %v508_v32 = vpop.f32.mrb[6].mxu0 }
 0x208   :  { %v509_v33 = vadd.f32 %v508_v32, %v303_v26  ;;  %v510_v34 = vpop.f32.mrb[7].mxu0  ;;  %v513_v36 = vmax.f32 %v505_v29, 0.0  ;;  %v551_v29 = vld [vmem:[%s2006_s6] sm:$0x3] }
 0x209   :  { %v511_v35 = vadd.f32 %v510_v34, %v307_v27  ;;  %v514_v38 = vmax.f32 %v507_v31, 0.0  ;;  %v556_v30 = vrot.slane %v551_v29, %v1948_v10  ;;  %v560_v31 = vrot.slane %v551_v29, %v1953_v12  ;;  %v770_v32 = vld [vmem:[%s2007_s7] sm:$0x3] }
 0x20a   :  { %v515_v37 = vmax.f32 %v509_v33, 0.0 }
 0x20b   :  { %v516_v39 = vmax.f32 %v511_v35, 0.0 }
 0x20c   :  { %v517_v40 = vpack.c.bf16 %v515_v37, %v513_v36  ;;  %v775_v36 = vrot.slane %v770_v32, %v1948_v10 }
 0x20d   :  { %v518_v41 = vpack.c.bf16 %v516_v39, %v514_v38  ;;  %v779_v39 = vrot.slane %v770_v32, %v1953_v12 }
 0x20f   :  { %755 = vmatprep.mubr.bf16.mxu1 %v518_v41 }
 0x210   :  { %756 = vmatmul.mubr.bf16.vlgmr.msra.gmra.mrb[4].mxu1 %v517_v40 }
 0x211   :  { %1261 = vmatpush1.bf16.msra.mxu1 %v1677_v42 }
 0x212   :  { %1262 = vmatprep.subr.bf16.mxu1 %v1682_v43 }
 0x215   :  { %1263 = vmatpush1.bf16.msra.mxu1 %v1680_v44 }
 0x216   :  { %1264 = vmatprep.subr.bf16.mxu1 %v1685_v45 }
 0x219   :  { %1265 = vmatpush1.bf16.msra.mxu1 %v1683_v46 }
 0x21a   :  { %1266 = vmatprep.subr.bf16.mxu1 %v1688_v47 }
 0x21d   :  { %1267 = vmatpush1.bf16.msra.mxu1 %v1686_v48 }
 0x21e   :  { %1268 = vmatprep.subr.bf16.mxu1 %v1691_v49 }
 0x221   :  { %1269 = vmatpush1.bf16.msra.mxu1 %v1689_v50 }
 0x222   :  { %1270 = vmatprep.subr.bf16.mxu1 %v1694_v51 }
 0x225   :  { %1271 = vmatpush1.bf16.msra.mxu1 %v1692_v52 }
 0x226   :  { %1272 = vmatprep.subr.bf16.mxu1 %v1697_v53  ;;  %v1088_v53 = vld [vmem:[%s2006_s6 + $0x2] sm:$0x3] }
 0x229   :  { %1273 = vmatpush1.bf16.msra.mxu1 %v1695_v54  ;;  %v1093_v54 = vrot.slane %v1088_v53, %v1948_v10 }
 0x22a   :  { %1274 = vmatprep.subr.bf16.mxu1 %v1700_v55  ;;  %v1097_v55 = vrot.slane %v1088_v53, %v1953_v12 }
 0x22d   :  { %1275 = vmatpush1.bf16.msra.mxu1 %v1698_v56  ;;  %v1307_v56 = vld [vmem:[%s2007_s7 + $0x2] sm:$0x3] }
 0x22e   :  { %1276 = vmatprep.subr.bf16.mxu1 %v1703_v57 }
 0x231   :  { %1277 = vmatpush1.bf16.msra.mxu1 %v1701_v58 }
 0x232   :  { %1278 = vmatprep.subr.bf16.mxu1 %v1706_v59 }
 0x235   :  { %1279 = vmatpush1.bf16.msra.mxu1 %v1704_v60  ;;  %v1312_v60 = vrot.slane %v1307_v56, %v1948_v10  ;;  %v1443_v10 = vld [vmem:[%s2008_s8] ss:$0 sm:$0xff] }
 0x236   :  { %1280 = vmatprep.subr.bf16.mxu1 %v1709_v61 }
 0x239   :  { %1281 = vmatpush1.bf16.msra.mxu1 %v1707_v62 }
 0x23a   :  { %1282 = vmatprep.subr.bf16.mxu1 %v1712_v63  ;;  %v1316_v63 = vrot.slane %v1307_v56, %v1953_v12 }
 0x23d   :  { %1283 = vmatpush1.bf16.msra.mxu1 %v1710_v0 }
 0x23e   :  { %1284 = vmatprep.subr.bf16.mxu1 %v1715_v1 }
 0x241   :  { %1285 = vmatpush1.bf16.msra.mxu1 %v1713_v2 }
 0x242   :  { %1286 = vmatprep.subr.bf16.mxu1 %v1718_v3 }
 0x245   :  { %v1041_v11 = vpop.f32.mrb[8].mxu0  ;;  %1287 = vmatpush1.bf16.msra.mxu1 %v1716_v6 }
 0x246   :  { %v1042_v14 = vadd.f32 %v1041_v11, %v840_v7  ;;  %v1043_v15 = vpop.f32.mrb[9].mxu0  ;;  %1288 = vmatprep.subr.bf16.mxu1 %v1721_v8 }
 0x247   :  { %v1044_v17 = vadd.f32 %v1043_v15, %v844_v9  ;;  %v1045_v18 = vpop.f32.mrb[10].mxu0 }
 0x248   :  { %v1046_v19 = vadd.f32 %v1045_v18, %v840_v7  ;;  %v1047_v20 = vpop.f32.mrb[11].mxu0  ;;  %v1050_v23 = vmax.f32 %v1042_v14, 0.0 }
 0x249   :  { %v1048_v21 = vadd.f32 %v1047_v20, %v844_v9  ;;  %1289 = vmatpush1.bf16.msra.mxu1 %v1719_v13  ;;  %v1051_v25 = vmax.f32 %v1044_v17, 0.0 }
 0x24a   :  { %v1052_v24 = vmax.f32 %v1046_v19, 0.0  ;;  %1290 = vmatprep.subr.bf16.mxu1 %v1724_v16  ;;  %v1828_v19 = vmov 1  }
 0x24b   :  { %v1053_v26 = vmax.f32 %v1048_v21, 0.0 }
 0x24c   :  { %v1054_v27 = vpack.c.bf16 %v1052_v24, %v1050_v23  ;;  %v1332_v24 = vand.u32 127, %v98_v4 }
 0x24d   :  { %v1055_v28 = vpack.c.bf16 %v1053_v26, %v1051_v25  ;;  %1291 = vmatpush1.bf16.msra.mxu1 %v1722_v22 }
 0x24e   :  { %vm1333_vm2 = vcmp.eq.s32.totalorder %v1332_v24, 0 }
 0x24f   :  { %1292 = vmatprep.mubr.bf16.mxu1 %v1055_v28 }
 0x250   :  { %1293 = vmatmul.mubr.bf16.vlgmr.msra.gmra.mrb[8].mxu1 %v1054_v27 }
 0x2e3   :  { %v757_v33 = vpop.f32.mrb[4].mxu1 }
 0x2e4   :  { %v758_v34 = vadd.f32 %v757_v33, %v556_v30  ;;  %v759_v35 = vpop.f32.mrb[5].mxu1 }
 0x2e5   :  { %v760_v37 = vadd.f32 %v759_v35, %v560_v31  ;;  %v761_v38 = vpop.f32.mrb[6].mxu1 }
 0x2e6   :  { %v766_v40 = vmax.f32 %v758_v34, 0.0  ;;  %v762_v41 = vadd.f32 %v761_v38, %v556_v30  ;;  %v763_v42 = vpop.f32.mrb[7].mxu1 }
 0x2e7   :  { %v767_v43 = vmax.f32 %v760_v37, 0.0  ;;  %v764_v44 = vadd.f32 %v763_v42, %v560_v31 }
 0x2e8   :  { %v768_v45 = vmax.f32 %v762_v41, 0.0  ;;  %v782_v46 = vmul.f32 %v775_v36, %v766_v40 }
 0x2e9   :  { %v769_v47 = vmax.f32 %v764_v44, 0.0  ;;  %v783_v48 = vmul.f32 %v779_v39, %v767_v43 }
 0x2ea   :  { %v784_v49 = vmul.f32 %v775_v36, %v768_v45 }
 0x2eb   :  { %v785_v50 = vmul.f32 %v779_v39, %v769_v47  ;;  %v786_v51 = vadd.f32 %v783_v48, %v782_v46 }
 0x2ed   :  { %787 = vadd.xlane.f32.xlu0 %v786_v51  ;;  %v789_v52 = vadd.f32 %v785_v50, %v784_v49 }
 0x2f1   :  { %790 = vadd.xlane.f32.xlu0 %v789_v52 }
 0x323   :  { %v1294_v57 = vpop.f32.mrb[8].mxu1 }
 0x324   :  { %v1295_v58 = vadd.f32 %v1294_v57, %v1093_v54  ;;  %v1296_v59 = vpop.f32.mrb[9].mxu1 }
 0x325   :  { %v1297_v61 = vadd.f32 %v1296_v59, %v1097_v55  ;;  %v1298_v62 = vpop.f32.mrb[10].mxu1 }
 0x326   :  { %v1303_v0 = vmax.f32 %v1295_v58, 0.0  ;;  %v1299_v1 = vadd.f32 %v1298_v62, %v1093_v54  ;;  %v1300_v2 = vpop.f32.mrb[11].mxu1 }
 0x327   :  { %v1304_v3 = vmax.f32 %v1297_v61, 0.0  ;;  %v1301_v5 = vadd.f32 %v1300_v2, %v1097_v55 }
 0x328   :  { %v1305_v6 = vmax.f32 %v1299_v1, 0.0  ;;  %v1319_v7 = vmul.f32 %v1312_v60, %v1303_v0 }
 0x329   :  { %v1306_v8 = vmax.f32 %v1301_v5, 0.0  ;;  %v1320_v9 = vmul.f32 %v1316_v63, %v1304_v3 }
 0x32a   :  { %v1321_v11 = vmul.f32 %v1312_v60, %v1305_v6 }
 0x32b   :  { %v1322_v13 = vmul.f32 %v1316_v63, %v1306_v8  ;;  %v1323_v14 = vadd.f32 %v1320_v9, %v1319_v7 }
 0x32d   :  { %1324 = vadd.xlane.f32.xlu1 %v1323_v14  ;;  %v1326_v15 = vadd.f32 %v1322_v13, %v1321_v11 }
 0x331   :  { %1327 = vadd.xlane.f32.xlu1 %v1326_v15 }
 0x37a   :  { %v788_v12 = vpop.xlane.xlu0 %787 }
 0x37b   :  { %v799_v16 = vadd.f32 %v1443_v10, %v788_v12 }
 0x37d   :  { %1336 = vperm.xlu0 %1518, %v799_v16  }
 0x37e   :  { %v791_v17 = vpop.xlane.xlu0 %790 }
 0x37f   :  { %v800_v18 = vadd.f32 %v1443_v10, %v791_v17 }
 0x381   :  { %1341 = vperm.xlu1 %1519, %v800_v18   ;;  %1521 = vset.pattern.permute.xlu0 %v1828_v19 }
 0x385   :  { %1520 = vset.pattern.permute.xlu1 %v1828_v19 }
 0x3ba   :  { %v1325_v20 = vpop.xlane.xlu1 %1324 }
 0x3bb   :  { %v1329_v21 = vadd.f32 %v1443_v10, %v1325_v20 }
 0x3bd   :  { %1346 = vperm.xlu1 %1520, %v1329_v21  }
 0x3be   :  { %v1328_v22 = vpop.xlane.xlu1 %1327 }
 0x3bf   :  { %v1330_v23 = vadd.f32 %v1443_v10, %v1328_v22 }
 0x3c1   :  { %1351 = vperm.xlu1 %1520, %v1330_v23  }
 0x3fc   :  { %v1337_v26 = vpop.permute.xlu0 %1336 }
 0x400   :  { %v1342_v25 = vpop.permute.xlu1 %1341 }
 0x43c   :  { %v1347_v27 = vpop.permute.xlu1 %1346 }
 0x43d   :  { %v1354_v28 = vsel %vm1333_vm2, %v1337_v26, %v1347_v27 }
 0x43e   :  { %1357 = vst.msk [vmem:[%s2009_s9] sm:$0xff] %vm1356_vm3, %v1354_v28 }
 0x440   :  { %v1352_v29 = vpop.permute.xlu1 %1351 }
 0x441   :  { %v1355_v30 = vsel %vm1333_vm2, %v1342_v25, %v1352_v29 }
 0x442   :  { %1358 = vst.msk [vmem:[%s2009_s9 + $0x8] sm:$0xff] %vm1356_vm3, %v1355_v30 }
 0x443   :  { %1363 = vsyncpa [#allocation3], 1 }
 0x444   :  { %1364 = vsyncpa [#allocation5], 1 }
 0x445   :  { %1365 = vsyncpa [#allocation8], 1 }

</bundles_post_ra>
